<compile_context>
chip_gen: v7x
topology: tpu7x:2x2x1
jax: 0.10.0
libtpu: 0.0.40
codegen_flags: <defaults>
</compile_context>

<pallas_src>
import jax
import jax.numpy as jnp
from jax.experimental import pallas as pl
from jax.experimental.pallas import tpu as pltpu


def _round_up(x, m):
    return (x + m - 1) // m * m


def _rnn_chunk_kernel(x_ref, h0_ref, w_hh_ref, alpha_ref, hid_ref, h_scratch):
    """One grid step = T_CHUNK timesteps of the recurrence for one batch block.

    x_ref   : (T_CHUNK, Bb, H)  precomputed  x_t @ W_fused + b_fused
    h0_ref  : (Bb, H)           initial hidden for this batch block
    w_hh_ref: (H, H)            hidden-to-hidden weights (pre-transposed)
    alpha_ref: (1, H)           per-unit leak rate
    hid_ref : (T_CHUNK, Bb, H)  hidden trajectory output
    h_scratch: (Bb, H) VMEM     hidden state carried across time chunks
    """
    # Initialize the carried hidden state at the first time chunk of this batch block.
    @pl.when(pl.program_id(1) == 0)
    def _():
        h_scratch[...] = h0_ref[...]

    # Hoist loop-invariant loads / broadcasts out of the unrolled time loop.
    w_hh = w_hh_ref[...]
    alpha = jnp.broadcast_to(alpha_ref[...], h_scratch.shape)
    t_chunk = x_ref.shape[0]

    def step(i, h):
        # Only the recurrent matmul is done per step; everything else was hoisted.
        pre = x_ref[i] + jnp.dot(h, w_hh, preferred_element_type=jnp.float32)
        cand = jnp.maximum(pre, 0.0)
        h_new = h + alpha * (cand - h)          # == (1 - alpha) * h + alpha * cand
        hid_ref[i] = h_new.astype(hid_ref.dtype)
        return h_new

    h = jax.lax.fori_loop(0, t_chunk, step, h_scratch[...], unroll=True)
    h_scratch[...] = h


def recurrent_net_time_variable(input_signal, hidden, params, *, t_chunk=8,
                                batch_block=None):
    """input_signal: (B, L, n_in); hidden: (B, n_hid).

    Returns (hidden_list (B,L,n_hid), output_list (B,L,n_out), h_final (B,n_hid)).
    """
    B, L, n_in = input_signal.shape
    n_hid = hidden.shape[1]
    n_out = params["w_out"].shape[1]
    dtype = input_signal.dtype

    # ---- Fold in_layer into the RNNCell input projection (algebraically exact:
    #      there is no nonlinearity between the two linears). ----
    w_fused = params["w_in"] @ params["w_ih"]                                    # (n_in, n_hid)
    b_fused = params["b_in"] @ params["w_ih"] + params["b_ih"] + params["b_hh"]  # (1, n_hid)

    # ---- Padding to (8, 128)-aligned tiles (exact: padded rows/cols stay 0). ----
    B_pad = _round_up(B, 8)
    H_pad = _round_up(n_hid, 128)
    t_chunk = max(1, min(int(t_chunk), L))
    L_pad = _round_up(L, t_chunk)

    # Big batched GEMM over all timesteps; the einsum output layout is already
    # time-major, so no separate input transpose is materialized.
    x_proj = jnp.einsum("bli,ih->lbh", input_signal.astype(jnp.float32), w_fused) + b_fused
    x_proj = jnp.pad(
        x_proj, ((0, L_pad - L), (0, B_pad - B), (0, H_pad - n_hid)))            # (L_pad,B_pad,H_pad)

    h0 = jnp.pad(hidden.astype(jnp.float32),
                 ((0, B_pad - B), (0, H_pad - n_hid)))                           # (B_pad, H_pad)
    w_hh = jnp.pad(params["w_hh"],
                   ((0, H_pad - n_hid), (0, H_pad - n_hid)))                     # (H_pad, H_pad)
    alpha = jnp.pad(params["alpha"], ((0, 0), (0, H_pad - n_hid)))               # (1, H_pad)

    # Batch blocking (lets v7x shard the "parallel" batch axis across its 2 TCs
    # when the batch is large; for small batches there is a single block).
    Bb = B_pad if batch_block is None else int(batch_block)
    assert Bb % 8 == 0 and B_pad % Bb == 0
    nb = B_pad // Bb
    nc = L_pad // t_chunk

    # Advisory cost hint so XLA schedules the hoisted GEMMs around the serial kernel.
    flops = 2 * L_pad * B_pad * H_pad * H_pad
    bytes_accessed = 4 * (2 * L_pad * B_pad * H_pad + H_pad * H_pad
                          + B_pad * H_pad + H_pad)
    cost = pl.CostEstimate(flops=flops, transcendentals=0,
                           bytes_accessed=bytes_accessed)

    # Explicit VMEM budget with headroom (double-buffered x / hid blocks + weights),
    # clamped below the v7x 64 MiB physical VMEM.
    vmem_needed = 4 * (2 * (2 * t_chunk * Bb * H_pad)       # x + hid, double-buffered
                       + 2 * H_pad * H_pad                   # w_hh
                       + 3 * Bb * H_pad                      # h0 (x2) + scratch
                       + 2 * 8 * 128)                        # alpha (padded tile)
    vmem_limit = int(min(max(2 * vmem_needed + (4 << 20), 16 << 20), 48 << 20))

    grid_spec = pltpu.PrefetchScalarGridSpec(
        num_scalar_prefetch=0,
        grid=(nb, nc),
        in_specs=[
            pl.BlockSpec((t_chunk, Bb, H_pad), lambda b, c: (c, b, 0)),   # x_proj chunk
            pl.BlockSpec((Bb, H_pad), lambda b, c: (b, 0)),               # h0
            pl.BlockSpec((H_pad, H_pad), lambda b, c: (0, 0)),            # w_hh
            pl.BlockSpec((1, H_pad), lambda b, c: (0, 0)),                # alpha
        ],
        out_specs=pl.BlockSpec((t_chunk, Bb, H_pad), lambda b, c: (c, b, 0)),
        scratch_shapes=[pltpu.VMEM((Bb, H_pad), jnp.float32)],
    )

    hid_tm = pl.pallas_call(
        _rnn_chunk_kernel,
        out_shape=jax.ShapeDtypeStruct((L_pad, B_pad, H_pad), jnp.float32),
        grid_spec=grid_spec,
        compiler_params=pltpu.CompilerParams(
            dimension_semantics=("parallel", "arbitrary"),   # time must stay sequential
            vmem_limit_bytes=vmem_limit,
        ),
        cost_estimate=cost,
    )(x_proj, h0, w_hh, alpha)

    # Strip padding; final hidden is just the last real row of the trajectory.
    hid_tm = hid_tm[:L, :B, :n_hid]                                  # (L, B, n_hid)
    h_final = hid_tm[L - 1].astype(dtype)                            # (B, n_hid)
    hidden_list = jnp.transpose(hid_tm, (1, 0, 2)).astype(dtype)     # (B, L, n_hid)

    # out_layer hoisted out of the kernel: one big GEMM over all timesteps,
    # with the batch-major transpose fused into the einsum output layout.
    output_list = (jnp.einsum("lbh,ho->blo", hid_tm, params["w_out"])
                   + params["b_out"]).astype(dtype)                  # (B, L, n_out)

    return hidden_list, output_list, h_final


def make_params(key, n_in, n_hid, n_out):
    """Deterministic synthetic parameters matching the PyTorch module's shapes.

    Linear weights are stored transposed as (in_features, out_features); biases
    as (1, out_features).
    """
    ks = jax.random.split(key, 8)
    scale = 0.1
    params = dict(
        w_in=scale * jax.random.normal(ks[0], (n_in, n_hid), jnp.float32),
        b_in=scale * jax.random.normal(ks[1], (1, n_hid), jnp.float32),
        w_ih=scale * jax.random.normal(ks[2], (n_hid, n_hid), jnp.float32),
        b_ih=scale * jax.random.normal(ks[3], (1, n_hid), jnp.float32),
        w_hh=scale * jax.random.normal(ks[4], (n_hid, n_hid), jnp.float32),
        b_hh=scale * jax.random.normal(ks[5], (1, n_hid), jnp.float32),
        w_out=scale * jax.random.normal(ks[6], (n_hid, n_out), jnp.float32),
        b_out=scale * jax.random.normal(ks[7], (1, n_out), jnp.float32),
        # alpha: Linear(1, n_hid, bias=False) with weight fixed to 0.3 applied to [1.0]
        # (PyTorch hard-codes shape (500,1); generalized here to n_hid).
        alpha=jnp.full((1, n_hid), 0.3, jnp.float32),
    )
    return params


def reference_forward(input_signal, hidden, params):
    """Pure-JAX unfused reference (mirrors the PyTorch loop) for correctness checks."""
    B, L, _ = input_signal.shape
    alpha = params["alpha"]
    hids, outs = [], []
    h = hidden
    for t in range(L):
        x = input_signal[:, t, :] @ params["w_in"] + params["b_in"]
        cand = jnp.maximum(
            x @ params["w_ih"] + params["b_ih"] + h @ params["w_hh"] + params["b_hh"], 0.0)
        h = (1.0 - alpha) * h + alpha * cand
        o = h @ params["w_out"] + params["b_out"]
        hids.append(h)
        outs.append(o)
    return (jnp.stack(hids, axis=1), jnp.stack(outs, axis=1), h)


if __name__ == "__main__":
    # Small shapes; L=12 with t_chunk=8 exercises chunk carry + time padding,
    # B=2 / n_hid=32 exercise the (8, 128) padding path.
    B, L, n_in, n_hid, n_out = 2, 12, 4, 32, 4

    key = jax.random.PRNGKey(0)
    k_p, k_x, k_h = jax.random.split(key, 3)
    params = make_params(k_p, n_in, n_hid, n_out)
    input_signal = jax.random.normal(k_x, (B, L, n_in), jnp.float32)
    hidden = jax.random.normal(k_h, (B, n_hid), jnp.float32)

    fwd = jax.jit(recurrent_net_time_variable)
    hid_list, out_list, h_final = jax.block_until_ready(
        fwd(input_signal, hidden, params))

    # Sanity check against the pure-JAX (unfused) reference.
    ref_hid, ref_out, ref_h = reference_forward(input_signal, hidden, params)
    assert hid_list.shape == (B, L, n_hid)
    assert out_list.shape == (B, L, n_out)
    assert h_final.shape == (B, n_hid)
    assert jnp.max(jnp.abs(hid_list - ref_hid)) < 1e-4
    assert jnp.max(jnp.abs(out_list - ref_out)) < 1e-4
    assert jnp.max(jnp.abs(h_final - ref_h)) < 1e-4

    print("KERNEL_OK")
</pallas_src>

<mosaic_0001>
module attributes {stable_mosaic.version = 11 : i64} {
  func.func @_rnn_chunk_kernel(%arg0: i32, %arg1: i32, %arg2: memref<8x8x128xf32, #tpu.memory_space<vmem>>, %arg3: memref<8x128xf32, #tpu.memory_space<vmem>>, %arg4: memref<128x128xf32, #tpu.memory_space<vmem>>, %arg5: memref<1x128xf32, #tpu.memory_space<vmem>>, %arg6: memref<8x8x128xf32, #tpu.memory_space<vmem>>, %arg7: memref<8x128xf32, #tpu.memory_space<vmem>>) attributes {dimension_semantics = [#tpu.dimension_semantics<parallel>, #tpu.dimension_semantics<arbitrary>], iteration_bounds = array<i64: 1, 2>, scalar_prefetch = 0 : i64, scratch_operands = 1 : i64, tpu.core_type = #tpu.core_type<tc>, window_params = [{transform_indices = @transform_0, window_bounds = array<i64: 8, 8, 128>}, {transform_indices = @transform_1, window_bounds = array<i64: 8, 128>}, {pipeline_mode = #tpu.pipeline_mode<synchronous>, transform_indices = @transform_2, window_bounds = array<i64: 128, 128>}, {pipeline_mode = #tpu.pipeline_mode<synchronous>, transform_indices = @transform_3, window_bounds = array<i64: 1, 128>}, {transform_indices = @transform_4, window_bounds = array<i64: 8, 8, 128>}]} {
    %c0_i32 = arith.constant 0 : i32
    %0 = arith.cmpi eq, %arg1, %c0_i32 : i32
    %1 = arith.extui %0 : i1 to i32
    %c0_i32_0 = arith.constant 0 : i32
    %2 = arith.cmpi ne, %1, %c0_i32_0 : i32
    scf.if %2 {
      %c0_56 = arith.constant 0 : index
      %c0_57 = arith.constant 0 : index
      %121 = vector.load %arg3[%c0_56, %c0_57] : memref<8x128xf32, #tpu.memory_space<vmem>>, vector<8x128xf32>
      %c0_58 = arith.constant 0 : index
      %c0_59 = arith.constant 0 : index
      %122 = vector.load %arg7[%c0_58, %c0_59] : memref<8x128xf32, #tpu.memory_space<vmem>>, vector<8x128xf32>
      tpu.vector_store %arg7[%c0_58, %c0_59], %121 {strides = array<i32>} : memref<8x128xf32, #tpu.memory_space<vmem>>, vector<8x128xf32>,
    } else {
    }
    %c0 = arith.constant 0 : index
    %c0_1 = arith.constant 0 : index
    %3 = vector.load %arg4[%c0, %c0_1] : memref<128x128xf32, #tpu.memory_space<vmem>>, vector<128x128xf32>
    %c0_2 = arith.constant 0 : index
    %c0_3 = arith.constant 0 : index
    %4 = vector.load %arg5[%c0_2, %c0_3] : memref<1x128xf32, #tpu.memory_space<vmem>>, vector<1x128xf32>
    %5 = vector.shape_cast %4 : vector<1x128xf32> to vector<1x128xf32>
    %6 = vector.broadcast %5 : vector<1x128xf32> to vector<8x128xf32>
    %c0_4 = arith.constant 0 : index
    %c0_5 = arith.constant 0 : index
    %7 = vector.load %arg7[%c0_4, %c0_5] : memref<8x128xf32, #tpu.memory_space<vmem>>, vector<8x128xf32>
    %c0_i32_6 = arith.constant 0 : i32
    %8 = arith.index_cast %c0_i32_6 : i32 to index
    %c0_7 = arith.constant 0 : index
    %c0_8 = arith.constant 0 : index
    %9 = vector.load %arg2[%8, %c0_7, %c0_8] : memref<8x8x128xf32, #tpu.memory_space<vmem>>, vector<1x8x128xf32>
    %10 = vector.shape_cast %9 : vector<1x8x128xf32> to vector<8x128xf32>
    %cst = arith.constant dense<0.000000e+00> : vector<8x128xf32>
    %11 = tpu.matmul %7, %3, %cst {dimension_numbers = #tpu.dot_dimension_numbers<[1], [0], [0], [1], [0, 0, 1, 1], [], []>} : vector<8x128xf32>, vector<128x128xf32>, vector<8x128xf32> -> vector<8x128xf32>
    %12 = arith.addf %10, %11 : vector<8x128xf32>
    %cst_9 = arith.constant 0.000000e+00 : f32
    %13 = vector.broadcast %cst_9 : f32 to vector<8x128xf32>
    %14 = arith.maximumf %12, %13 : vector<8x128xf32>
    %15 = arith.subf %14, %7 : vector<8x128xf32>
    %16 = arith.mulf %6, %15 : vector<8x128xf32>
    %17 = arith.addf %7, %16 : vector<8x128xf32>
    %18 = arith.index_cast %c0_i32_6 : i32 to index
    %c0_10 = arith.constant 0 : index
    %c0_11 = arith.constant 0 : index
    %19 = vector.load %arg6[%18, %c0_10, %c0_11] : memref<8x8x128xf32, #tpu.memory_space<vmem>>, vector<1x8x128xf32>
    %20 = vector.shape_cast %19 : vector<1x8x128xf32> to vector<8x128xf32>
    %21 = vector.shape_cast %17 : vector<8x128xf32> to vector<1x8x128xf32>
    tpu.vector_store %arg6[%18, %c0_10, %c0_11], %21 {strides = array<i32>} : memref<8x8x128xf32, #tpu.memory_space<vmem>>, vector<1x8x128xf32>,
    %c1_i32 = arith.constant 1 : i32
    %22 = arith.index_cast %c1_i32 : i32 to index
    %c0_12 = arith.constant 0 : index
    %c0_13 = arith.constant 0 : index
    %23 = vector.load %arg2[%22, %c0_12, %c0_13] : memref<8x8x128xf32, #tpu.memory_space<vmem>>, vector<1x8x128xf32>
    %24 = vector.shape_cast %23 : vector<1x8x128xf32> to vector<8x128xf32>
    %cst_14 = arith.constant dense<0.000000e+00> : vector<8x128xf32>
    %25 = tpu.matmul %17, %3, %cst_14 {dimension_numbers = #tpu.dot_dimension_numbers<[1], [0], [0], [1], [0, 0, 1, 1], [], []>} : vector<8x128xf32>, vector<128x128xf32>, vector<8x128xf32> -> vector<8x128xf32>
    %26 = arith.addf %24, %25 : vector<8x128xf32>
    %cst_15 = arith.constant 0.000000e+00 : f32
    %27 = vector.broadcast %cst_15 : f32 to vector<8x128xf32>
    %28 = arith.maximumf %26, %27 : vector<8x128xf32>
    %29 = arith.subf %28, %17 : vector<8x128xf32>
    %30 = arith.mulf %6, %29 : vector<8x128xf32>
    %31 = arith.addf %17, %30 : vector<8x128xf32>
    %32 = arith.index_cast %c1_i32 : i32 to index
    %c0_16 = arith.constant 0 : index
    %c0_17 = arith.constant 0 : index
    %33 = vector.load %arg6[%32, %c0_16, %c0_17] : memref<8x8x128xf32, #tpu.memory_space<vmem>>, vector<1x8x128xf32>
    %34 = vector.shape_cast %33 : vector<1x8x128xf32> to vector<8x128xf32>
    %35 = vector.shape_cast %31 : vector<8x128xf32> to vector<1x8x128xf32>
    tpu.vector_store %arg6[%32, %c0_16, %c0_17], %35 {strides = array<i32>} : memref<8x8x128xf32, #tpu.memory_space<vmem>>, vector<1x8x128xf32>,
    %c2_i32 = arith.constant 2 : i32
    %36 = arith.index_cast %c2_i32 : i32 to index
    %c0_18 = arith.constant 0 : index
    %c0_19 = arith.constant 0 : index
    %37 = vector.load %arg2[%36, %c0_18, %c0_19] : memref<8x8x128xf32, #tpu.memory_space<vmem>>, vector<1x8x128xf32>
    %38 = vector.shape_cast %37 : vector<1x8x128xf32> to vector<8x128xf32>
    %cst_20 = arith.constant dense<0.000000e+00> : vector<8x128xf32>
    %39 = tpu.matmul %31, %3, %cst_20 {dimension_numbers = #tpu.dot_dimension_numbers<[1], [0], [0], [1], [0, 0, 1, 1], [], []>} : vector<8x128xf32>, vector<128x128xf32>, vector<8x128xf32> -> vector<8x128xf32>
    %40 = arith.addf %38, %39 : vector<8x128xf32>
    %cst_21 = arith.constant 0.000000e+00 : f32
    %41 = vector.broadcast %cst_21 : f32 to vector<8x128xf32>
    %42 = arith.maximumf %40, %41 : vector<8x128xf32>
    %43 = arith.subf %42, %31 : vector<8x128xf32>
    %44 = arith.mulf %6, %43 : vector<8x128xf32>
    %45 = arith.addf %31, %44 : vector<8x128xf32>
    %46 = arith.index_cast %c2_i32 : i32 to index
    %c0_22 = arith.constant 0 : index
    %c0_23 = arith.constant 0 : index
    %47 = vector.load %arg6[%46, %c0_22, %c0_23] : memref<8x8x128xf32, #tpu.memory_space<vmem>>, vector<1x8x128xf32>
    %48 = vector.shape_cast %47 : vector<1x8x128xf32> to vector<8x128xf32>
    %49 = vector.shape_cast %45 : vector<8x128xf32> to vector<1x8x128xf32>
    tpu.vector_store %arg6[%46, %c0_22, %c0_23], %49 {strides = array<i32>} : memref<8x8x128xf32, #tpu.memory_space<vmem>>, vector<1x8x128xf32>,
    %c3_i32 = arith.constant 3 : i32
    %50 = arith.index_cast %c3_i32 : i32 to index
    %c0_24 = arith.constant 0 : index
    %c0_25 = arith.constant 0 : index
    %51 = vector.load %arg2[%50, %c0_24, %c0_25] : memref<8x8x128xf32, #tpu.memory_space<vmem>>, vector<1x8x128xf32>
    %52 = vector.shape_cast %51 : vector<1x8x128xf32> to vector<8x128xf32>
    %cst_26 = arith.constant dense<0.000000e+00> : vector<8x128xf32>
    %53 = tpu.matmul %45, %3, %cst_26 {dimension_numbers = #tpu.dot_dimension_numbers<[1], [0], [0], [1], [0, 0, 1, 1], [], []>} : vector<8x128xf32>, vector<128x128xf32>, vector<8x128xf32> -> vector<8x128xf32>
    %54 = arith.addf %52, %53 : vector<8x128xf32>
    %cst_27 = arith.constant 0.000000e+00 : f32
    %55 = vector.broadcast %cst_27 : f32 to vector<8x128xf32>
    %56 = arith.maximumf %54, %55 : vector<8x128xf32>
    %57 = arith.subf %56, %45 : vector<8x128xf32>
    %58 = arith.mulf %6, %57 : vector<8x128xf32>
    %59 = arith.addf %45, %58 : vector<8x128xf32>
    %60 = arith.index_cast %c3_i32 : i32 to index
    %c0_28 = arith.constant 0 : index
    %c0_29 = arith.constant 0 : index
    %61 = vector.load %arg6[%60, %c0_28, %c0_29] : memref<8x8x128xf32, #tpu.memory_space<vmem>>, vector<1x8x128xf32>
    %62 = vector.shape_cast %61 : vector<1x8x128xf32> to vector<8x128xf32>
    %63 = vector.shape_cast %59 : vector<8x128xf32> to vector<1x8x128xf32>
    tpu.vector_store %arg6[%60, %c0_28, %c0_29], %63 {strides = array<i32>} : memref<8x8x128xf32, #tpu.memory_space<vmem>>, vector<1x8x128xf32>,
    %c4_i32 = arith.constant 4 : i32
    %64 = arith.index_cast %c4_i32 : i32 to index
    %c0_30 = arith.constant 0 : index
    %c0_31 = arith.constant 0 : index
    %65 = vector.load %arg2[%64, %c0_30, %c0_31] : memref<8x8x128xf32, #tpu.memory_space<vmem>>, vector<1x8x128xf32>
    %66 = vector.shape_cast %65 : vector<1x8x128xf32> to vector<8x128xf32>
    %cst_32 = arith.constant dense<0.000000e+00> : vector<8x128xf32>
    %67 = tpu.matmul %59, %3, %cst_32 {dimension_numbers = #tpu.dot_dimension_numbers<[1], [0], [0], [1], [0, 0, 1, 1], [], []>} : vector<8x128xf32>, vector<128x128xf32>, vector<8x128xf32> -> vector<8x128xf32>
    %68 = arith.addf %66, %67 : vector<8x128xf32>
    %cst_33 = arith.constant 0.000000e+00 : f32
    %69 = vector.broadcast %cst_33 : f32 to vector<8x128xf32>
    %70 = arith.maximumf %68, %69 : vector<8x128xf32>
    %71 = arith.subf %70, %59 : vector<8x128xf32>
    %72 = arith.mulf %6, %71 : vector<8x128xf32>
    %73 = arith.addf %59, %72 : vector<8x128xf32>
    %74 = arith.index_cast %c4_i32 : i32 to index
    %c0_34 = arith.constant 0 : index
    %c0_35 = arith.constant 0 : index
    %75 = vector.load %arg6[%74, %c0_34, %c0_35] : memref<8x8x128xf32, #tpu.memory_space<vmem>>, vector<1x8x128xf32>
    %76 = vector.shape_cast %75 : vector<1x8x128xf32> to vector<8x128xf32>
    %77 = vector.shape_cast %73 : vector<8x128xf32> to vector<1x8x128xf32>
    tpu.vector_store %arg6[%74, %c0_34, %c0_35], %77 {strides = array<i32>} : memref<8x8x128xf32, #tpu.memory_space<vmem>>, vector<1x8x128xf32>,
    %c5_i32 = arith.constant 5 : i32
    %78 = arith.index_cast %c5_i32 : i32 to index
    %c0_36 = arith.constant 0 : index
    %c0_37 = arith.constant 0 : index
    %79 = vector.load %arg2[%78, %c0_36, %c0_37] : memref<8x8x128xf32, #tpu.memory_space<vmem>>, vector<1x8x128xf32>
    %80 = vector.shape_cast %79 : vector<1x8x128xf32> to vector<8x128xf32>
    %cst_38 = arith.constant dense<0.000000e+00> : vector<8x128xf32>
    %81 = tpu.matmul %73, %3, %cst_38 {dimension_numbers = #tpu.dot_dimension_numbers<[1], [0], [0], [1], [0, 0, 1, 1], [], []>} : vector<8x128xf32>, vector<128x128xf32>, vector<8x128xf32> -> vector<8x128xf32>
    %82 = arith.addf %80, %81 : vector<8x128xf32>
    %cst_39 = arith.constant 0.000000e+00 : f32
    %83 = vector.broadcast %cst_39 : f32 to vector<8x128xf32>
    %84 = arith.maximumf %82, %83 : vector<8x128xf32>
    %85 = arith.subf %84, %73 : vector<8x128xf32>
    %86 = arith.mulf %6, %85 : vector<8x128xf32>
    %87 = arith.addf %73, %86 : vector<8x128xf32>
    %88 = arith.index_cast %c5_i32 : i32 to index
    %c0_40 = arith.constant 0 : index
    %c0_41 = arith.constant 0 : index
    %89 = vector.load %arg6[%88, %c0_40, %c0_41] : memref<8x8x128xf32, #tpu.memory_space<vmem>>, vector<1x8x128xf32>
    %90 = vector.shape_cast %89 : vector<1x8x128xf32> to vector<8x128xf32>
    %91 = vector.shape_cast %87 : vector<8x128xf32> to vector<1x8x128xf32>
    tpu.vector_store %arg6[%88, %c0_40, %c0_41], %91 {strides = array<i32>} : memref<8x8x128xf32, #tpu.memory_space<vmem>>, vector<1x8x128xf32>,
    %c6_i32 = arith.constant 6 : i32
    %92 = arith.index_cast %c6_i32 : i32 to index
    %c0_42 = arith.constant 0 : index
    %c0_43 = arith.constant 0 : index
    %93 = vector.load %arg2[%92, %c0_42, %c0_43] : memref<8x8x128xf32, #tpu.memory_space<vmem>>, vector<1x8x128xf32>
    %94 = vector.shape_cast %93 : vector<1x8x128xf32> to vector<8x128xf32>
    %cst_44 = arith.constant dense<0.000000e+00> : vector<8x128xf32>
    %95 = tpu.matmul %87, %3, %cst_44 {dimension_numbers = #tpu.dot_dimension_numbers<[1], [0], [0], [1], [0, 0, 1, 1], [], []>} : vector<8x128xf32>, vector<128x128xf32>, vector<8x128xf32> -> vector<8x128xf32>
    %96 = arith.addf %94, %95 : vector<8x128xf32>
    %cst_45 = arith.constant 0.000000e+00 : f32
    %97 = vector.broadcast %cst_45 : f32 to vector<8x128xf32>
    %98 = arith.maximumf %96, %97 : vector<8x128xf32>
    %99 = arith.subf %98, %87 : vector<8x128xf32>
    %100 = arith.mulf %6, %99 : vector<8x128xf32>
    %101 = arith.addf %87, %100 : vector<8x128xf32>
    %102 = arith.index_cast %c6_i32 : i32 to index
    %c0_46 = arith.constant 0 : index
    %c0_47 = arith.constant 0 : index
    %103 = vector.load %arg6[%102, %c0_46, %c0_47] : memref<8x8x128xf32, #tpu.memory_space<vmem>>, vector<1x8x128xf32>
    %104 = vector.shape_cast %103 : vector<1x8x128xf32> to vector<8x128xf32>
    %105 = vector.shape_cast %101 : vector<8x128xf32> to vector<1x8x128xf32>
    tpu.vector_store %arg6[%102, %c0_46, %c0_47], %105 {strides = array<i32>} : memref<8x8x128xf32, #tpu.memory_space<vmem>>, vector<1x8x128xf32>,
    %c7_i32 = arith.constant 7 : i32
    %106 = arith.index_cast %c7_i32 : i32 to index
    %c0_48 = arith.constant 0 : index
    %c0_49 = arith.constant 0 : index
    %107 = vector.load %arg2[%106, %c0_48, %c0_49] : memref<8x8x128xf32, #tpu.memory_space<vmem>>, vector<1x8x128xf32>
    %108 = vector.shape_cast %107 : vector<1x8x128xf32> to vector<8x128xf32>
    %cst_50 = arith.constant dense<0.000000e+00> : vector<8x128xf32>
    %109 = tpu.matmul %101, %3, %cst_50 {dimension_numbers = #tpu.dot_dimension_numbers<[1], [0], [0], [1], [0, 0, 1, 1], [], []>} : vector<8x128xf32>, vector<128x128xf32>, vector<8x128xf32> -> vector<8x128xf32>
    %110 = arith.addf %108, %109 : vector<8x128xf32>
    %cst_51 = arith.constant 0.000000e+00 : f32
    %111 = vector.broadcast %cst_51 : f32 to vector<8x128xf32>
    %112 = arith.maximumf %110, %111 : vector<8x128xf32>
    %113 = arith.subf %112, %101 : vector<8x128xf32>
    %114 = arith.mulf %6, %113 : vector<8x128xf32>
    %115 = arith.addf %101, %114 : vector<8x128xf32>
    %116 = arith.index_cast %c7_i32 : i32 to index
    %c0_52 = arith.constant 0 : index
    %c0_53 = arith.constant 0 : index
    %117 = vector.load %arg6[%116, %c0_52, %c0_53] : memref<8x8x128xf32, #tpu.memory_space<vmem>>, vector<1x8x128xf32>
    %118 = vector.shape_cast %117 : vector<1x8x128xf32> to vector<8x128xf32>
    %119 = vector.shape_cast %115 : vector<8x128xf32> to vector<1x8x128xf32>
    tpu.vector_store %arg6[%116, %c0_52, %c0_53], %119 {strides = array<i32>} : memref<8x8x128xf32, #tpu.memory_space<vmem>>, vector<1x8x128xf32>,
    %c8_i32 = arith.constant 8 : i32
    %c0_54 = arith.constant 0 : index
    %c0_55 = arith.constant 0 : index
    %120 = vector.load %arg7[%c0_54, %c0_55] : memref<8x128xf32, #tpu.memory_space<vmem>>, vector<8x128xf32>
    tpu.vector_store %arg7[%c0_54, %c0_55], %115 {strides = array<i32>} : memref<8x128xf32, #tpu.memory_space<vmem>>, vector<8x128xf32>,
    return
  }
  func.func @transform_0(%arg0: i32, %arg1: i32) -> (i32, i32, i32) {
    %c0_i32 = arith.constant 0 : i32
    %c0_i32_0 = arith.constant 0 : i32
    return %arg1, %arg0, %c0_i32 : i32, i32, i32
  }
  func.func @transform_1(%arg0: i32, %arg1: i32) -> (i32, i32) {
    %c0_i32 = arith.constant 0 : i32
    %c0_i32_0 = arith.constant 0 : i32
    return %arg0, %c0_i32 : i32, i32
  }
  func.func @transform_2(%arg0: i32, %arg1: i32) -> (i32, i32) {
    %c0_i32 = arith.constant 0 : i32
    %c0_i32_0 = arith.constant 0 : i32
    %c0_i32_1 = arith.constant 0 : i32
    return %c0_i32, %c0_i32_0 : i32, i32
  }
  func.func @transform_3(%arg0: i32, %arg1: i32) -> (i32, i32) {
    %c0_i32 = arith.constant 0 : i32
    %c0_i32_0 = arith.constant 0 : i32
    %c0_i32_1 = arith.constant 0 : i32
    return %c0_i32, %c0_i32_0 : i32, i32
  }
  func.func @transform_4(%arg0: i32, %arg1: i32) -> (i32, i32, i32) {
    %c0_i32 = arith.constant 0 : i32
    %c0_i32_0 = arith.constant 0 : i32
    return %arg1, %arg0, %c0_i32 : i32, i32, i32
  }
}

</mosaic_0001>

<bundles_post_ra>
// kernel: recurrent_net_time_variable.1
= control target key start
LH: loop header
LB: loop body
LE: loop exit
PB: predicated region body
PF: predicated region fallthrough
CT: control target
= control target key end

     0   :  { %s1718_s15 = smov 0   ;;  %s1720_s16 = smov 0   ;;  %s1995_s0 = inlined_call_operand.vmem [shape: f32[16,8,128], index: 0, kind: input, shape index: {}]   ;;  %s1996_s1 = inlined_call_operand.vmem [shape: f32[8,128], index: 1, kind: input, shape index: {}]   ;;  %s1997_s2 = inlined_call_operand.vmem [shape: f32[128,128], index: 2, kind: input, shape index: {}]   ;;  %s1998_s3 = inlined_call_operand.vmem [shape: f32[1,128], index: 3, kind: input, shape index: {}]   ;;  %s1999_s4 = inlined_call_operand.vmem [shape: f32[16,8,128], index: 4, kind: output, shape index: {}]  }
   0x1   :  { %s1722_s17 = smov 0  }
   0x2 LB: > { %s23_s18 = sadd.s32 1, %s1684_s16  ;;  %p1008_p0 = scmp.ge.s32.totalorder %s1688_s17, 1  ;;  %s1688_s17 = sphi %s1722_s17, %s14_s17   ;;  %s1684_s16 = sphi %s1720_s16, %s2001_s16   ;;  %s1680_s15 = sphi %s1718_s15, %s2000_s15  }
   0x3   : > { %p24_p1 = scmp.ge.s32.totalorder %s23_s18, 2  ;;  %p191_p2 = scmp.lt.s32.totalorder %s1688_s17, 3 }
   0x5   : > { %s2003_s18 = smov (%p24_p1, %s23_s18), 0  ;;  %p192_p3 = pnand %p1008_p0, %p191_p2 }
   0x6   : > { %s1009_s19 = sshll.u32 (!%p192_p3), %s1680_s15, 3  ;;  %p1013_p5 = scmp.ne.s32.totalorder (!%p192_p3), %s1680_s15, 0 }
   0x7   : > { %195 = sbr.rel (%p192_p3) target bundleno = 1832 (0x728), region = 36  ;;  %p228_p4 = scmp.lt.s32.totalorder (!%p192_p3), %s1009_s19, 15 }
   0xe   : > { %s2005_s19 = smov (!%p228_p4, %s1009_s19), 15  ;;  %252 = sbr.rel (%p1013_p5) target bundleno = 21 (0x15), region = 40 }
   0xf   : > { %s1010_s20 = sshll.u32 %s2005_s19, 3  ;;  %v253_v0 = vld [vmem:[%s1996_s1] sm:$0xff] (!%p1013_p5) }
  0x10   : > { %s1739_s23 = scalar_lea.vmem %s1995_s0, %s1010_s20  ;;  %s1744_s26 = scalar_lea.vmem %s1999_s4, %s1010_s20  ;;  %254 = vst [vmem:[#allocation2] sm:$0xff] (!%p1013_p5), %v253_v0 }
  0x15 PF: > { %v255_v1 = vld [vmem:[%s1997_s2] sm:$0xff]  ;;  %v256_v2 = vld [vmem:[%s1997_s2 + $0x8] sm:$0xff]  ;;  %v257_v3 = vld [vmem:[%s1997_s2 + $0x10] sm:$0xff]  ;;  %v1690_v4 = vmov 0.0|0.0   ;;  %vm1691_vm0 = vmmov 0   ;;  %v1692_v7 = vmov 0.0  }
  0x16   : > { %1447 = vmatprep.subr.bf16.mxu0 %v1690_v4  ;;  %v1759_v5 = vpack.c.bf16 %v256_v2, %v255_v1  ;;  %v258_v6 = vld [vmem:[%s1997_s2 + $0x18] sm:$0xff]  ;;  %1199 = vmatprep.mubr.msk.f32.mxu0 %vm1691_vm0, %v1692_v7  ;;  %v259_v9 = vld [vmem:[%s1997_s2 + $0x20] sm:$0xff]  ;;  %v260_v10 = vld [vmem:[%s1997_s2 + $0x28] sm:$0xff] }
  0x17   : > { %1471 = vmatprep.subr.bf16.mxu1 %v1690_v4  ;;  %1234 = vmatprep.mubr.msk.f32.mxu1 %vm1691_vm0, %v1692_v7  ;;  %v1770_v8 = vpack.c.bf16 %v258_v6, %v257_v3  ;;  %v1782_v11 = vpack.c.bf16 %v260_v10, %v259_v9  ;;  %v261_v12 = vld [vmem:[%s1997_s2 + $0x30] sm:$0xff]  ;;  %v262_v13 = vld [vmem:[%s1997_s2 + $0x38] sm:$0xff]  ;;  %v263_v15 = vld [vmem:[%s1997_s2 + $0x40] sm:$0xff] }
  0x18   : > { %1449 = vmatpush3.bf16.msra.mxu0 %v1759_v5  ;;  %1473 = vmatpush3.bf16.msra.mxu1 %v1759_v5  ;;  %v1794_v14 = vpack.c.bf16 %v262_v13, %v261_v12  ;;  %v264_v16 = vld [vmem:[%s1997_s2 + $0x48] sm:$0xff]  ;;  %v265_v18 = vld [vmem:[%s1997_s2 + $0x50] sm:$0xff]  ;;  %v266_v19 = vld [vmem:[%s1997_s2 + $0x58] sm:$0xff] }
  0x19   : > { %1450 = vmatprep.subr.bf16.mxu0 %v1690_v4  ;;  %1474 = vmatprep.subr.bf16.mxu1 %v1690_v4  ;;  %v1806_v17 = vpack.c.bf16 %v264_v16, %v263_v15  ;;  %v1818_v20 = vpack.c.bf16 %v266_v19, %v265_v18  ;;  %v267_v21 = vld [vmem:[%s1997_s2 + $0x60] sm:$0xff]  ;;  %v268_v22 = vld [vmem:[%s1997_s2 + $0x68] sm:$0xff]  ;;  %v269_v24 = vld [vmem:[%s1997_s2 + $0x70] sm:$0xff] }
  0x1a   : > { %v1830_v23 = vpack.c.bf16 %v268_v22, %v267_v21  ;;  %v270_v25 = vld [vmem:[%s1997_s2 + $0x78] sm:$0xff]  ;;  %v278_v27 = vld [vmem:[#allocation2] sm:$0xff]  ;;  %v1015_v37 = vld [vmem:[%s1739_s23 + $0x8] sm:$0xff] }
  0x1b   : > { %v1842_v26 = vpack.c.bf16 %v270_v25, %v269_v24  ;;  %v279_v28 = vld [vmem:[%s1739_s23] sm:$0xff]  ;;  %v1017_v45 = vld [vmem:[%s1739_s23 + $0x10] sm:$0xff]  ;;  %v1019_v53 = vld [vmem:[%s1739_s23 + $0x18] sm:$0xff] }
  0x1c   : > { %1452 = vmatpush3.bf16.msra.mxu0 %v1770_v8  ;;  %1476 = vmatpush3.bf16.msra.mxu1 %v1770_v8  ;;  %v1873_v33 = vld [vmem:[%s1998_s3] ss:$0 sm:$0xff]  ;;  %v1027_v21 = vld [vmem:[%s1739_s23 + $0x38] sm:$0xff] }
  0x1d   : > { %1453 = vmatprep.subr.bf16.mxu0 %v1690_v4  ;;  %1477 = vmatprep.subr.bf16.mxu1 %v1690_v4  ;;  %v1021_v61 = vld [vmem:[%s1739_s23 + $0x20] sm:$0xff] }
  0x20   : > { %1455 = vmatpush3.bf16.msra.mxu0 %v1782_v11  ;;  %1479 = vmatpush3.bf16.msra.mxu1 %v1782_v11 }
  0x21   : > { %1456 = vmatprep.subr.bf16.mxu0 %v1690_v4  ;;  %1480 = vmatprep.subr.bf16.mxu1 %v1690_v4 }
  0x24   : > { %1458 = vmatpush3.bf16.msra.mxu0 %v1794_v14  ;;  %1482 = vmatpush3.bf16.msra.mxu1 %v1794_v14 }
  0x25   : > { %1459 = vmatprep.subr.bf16.mxu0 %v1690_v4  ;;  %1483 = vmatprep.subr.bf16.mxu1 %v1690_v4 }
  0x28   : > { %1461 = vmatpush3.bf16.msra.mxu0 %v1806_v17  ;;  %1485 = vmatpush3.bf16.msra.mxu1 %v1806_v17 }
  0x29   : > { %1462 = vmatprep.subr.bf16.mxu0 %v1690_v4  ;;  %1486 = vmatprep.subr.bf16.mxu1 %v1690_v4 }
  0x2c   : > { %1464 = vmatpush3.bf16.msra.mxu0 %v1818_v20  ;;  %1488 = vmatpush3.bf16.msra.mxu1 %v1818_v20 }
  0x2d   : > { %1465 = vmatprep.subr.bf16.mxu0 %v1690_v4  ;;  %1489 = vmatprep.subr.bf16.mxu1 %v1690_v4 }
  0x30   : > { %1467 = vmatpush3.bf16.msra.mxu0 %v1830_v23  ;;  %1491 = vmatpush3.bf16.msra.mxu1 %v1830_v23 }
  0x31   : > { %1468 = vmatprep.subr.bf16.mxu0 %v1690_v4  ;;  %1492 = vmatprep.subr.bf16.mxu1 %v1690_v4 }
  0x34   : > { %1470 = vmatpush3.bf16.msra.mxu0 %v1842_v26  ;;  %1494 = vmatpush3.bf16.msra.mxu1 %v1842_v26 }
  0x35   : > { %1495 = vmatprep.subr.bf16.mxu0 %v1690_v4  ;;  %1519 = vmatprep.subr.bf16.mxu1 %v1690_v4 }
  0x37   : > { %1200 = vmatmul.mubr.f32.vlgmr.msra.gmra.mrb[0].mxu0 %v278_v27 }
  0x38   : > { %1497 = vmatpush3.bf16.msra.mxu0 %v1759_v5  ;;  %1269 = vmatprep.mubr.msk.f32.mxu0 %vm1691_vm0, %v1692_v7 }
  0x39   : > { %1498 = vmatprep.subr.bf16.mxu0 %v1690_v4 }
  0x3c   : > { %1500 = vmatpush3.bf16.msra.mxu0 %v1770_v8 }
  0x3d   : > { %1501 = vmatprep.subr.bf16.mxu0 %v1690_v4 }
  0x40   : > { %1503 = vmatpush3.bf16.msra.mxu0 %v1782_v11 }
  0x41   : > { %1504 = vmatprep.subr.bf16.mxu0 %v1690_v4 }
  0x44   : > { %1506 = vmatpush3.bf16.msra.mxu0 %v1794_v14 }
  0x45   : > { %1507 = vmatprep.subr.bf16.mxu0 %v1690_v4 }
  0x48   : > { %1509 = vmatpush3.bf16.msra.mxu0 %v1806_v17 }
  0x49   : > { %1510 = vmatprep.subr.bf16.mxu0 %v1690_v4 }
  0x4c   : > { %1512 = vmatpush3.bf16.msra.mxu0 %v1818_v20 }
  0x4d   : > { %1513 = vmatprep.subr.bf16.mxu0 %v1690_v4 }
  0x50   : > { %1515 = vmatpush3.bf16.msra.mxu0 %v1830_v23 }
  0x51   : > { %1516 = vmatprep.subr.bf16.mxu0 %v1690_v4 }
  0x54   : > { %1518 = vmatpush3.bf16.msra.mxu0 %v1842_v26 }
  0x55   : > { %1543 = vmatprep.subr.bf16.mxu0 %v1690_v4 }
 0x10a   : > { %v346_v29 = vpop.f32.mrb[0].mxu0 }
 0x10b   : > { %v350_v30 = vadd.f32 %v346_v29, %v279_v28  ;;  %v1201_v31 = vpop.f32.mrb[1].mxu0 }
 0x10d   : > { %v351_v32 = vmax.f32 %v350_v30, 0.0 }
 0x10f   : > { %v352_v34 = vsub.f32 %v351_v32, %v278_v27 }
 0x111   : > { %v353_v35 = vmul.f32 %v1873_v33, %v352_v34 }
 0x113   : > { %v354_v36 = vadd.f32 %v353_v35, %v278_v27 }
 0x115   : > { %355 = vst [vmem:[%s1744_s26] sm:$0xff] %v354_v36  ;;  %1235 = vmatmul.mubr.f32.vlgmr.msra.gmra.mrb[0].mxu1 %v354_v36 }
 0x116   : > { %1521 = vmatpush3.bf16.msra.mxu1 %v1759_v5  ;;  %1304 = vmatprep.mubr.msk.f32.mxu1 %vm1691_vm0, %v1692_v7 }
 0x117   : > { %1522 = vmatprep.subr.bf16.mxu1 %v1690_v4 }
 0x11a   : > { %1524 = vmatpush3.bf16.msra.mxu1 %v1770_v8 }
 0x11b   : > { %1525 = vmatprep.subr.bf16.mxu1 %v1690_v4 }
 0x11e   : > { %1527 = vmatpush3.bf16.msra.mxu1 %v1782_v11 }
 0x11f   : > { %1528 = vmatprep.subr.bf16.mxu1 %v1690_v4 }
 0x122   : > { %1530 = vmatpush3.bf16.msra.mxu1 %v1794_v14 }
 0x123   : > { %1531 = vmatprep.subr.bf16.mxu1 %v1690_v4 }
 0x126   : > { %1533 = vmatpush3.bf16.msra.mxu1 %v1806_v17 }
 0x127   : > { %1534 = vmatprep.subr.bf16.mxu1 %v1690_v4 }
 0x12a   : > { %1536 = vmatpush3.bf16.msra.mxu1 %v1818_v20 }
 0x12b   : > { %1537 = vmatprep.subr.bf16.mxu1 %v1690_v4 }
 0x12e   : > { %1539 = vmatpush3.bf16.msra.mxu1 %v1830_v23 }
 0x12f   : > { %1540 = vmatprep.subr.bf16.mxu1 %v1690_v4 }
 0x132   : > { %1542 = vmatpush3.bf16.msra.mxu1 %v1842_v26 }
 0x133   : > { %1567 = vmatprep.subr.bf16.mxu1 %v1690_v4 }
 0x1e8   : > { %v424_v38 = vpop.f32.mrb[0].mxu1 }
 0x1e9   : > { %v428_v39 = vadd.f32 %v1015_v37, %v424_v38  ;;  %v1236_v40 = vpop.f32.mrb[1].mxu1 }
 0x1eb   : > { %v429_v41 = vmax.f32 %v428_v39, 0.0 }
 0x1ed   : > { %v430_v42 = vsub.f32 %v429_v41, %v354_v36 }
 0x1ef   : > { %v431_v43 = vmul.f32 %v1873_v33, %v430_v42 }
 0x1f1   : > { %v432_v44 = vadd.f32 %v431_v43, %v354_v36 }
 0x1f3   : > { %1016 = vst [vmem:[%s1744_s26 + $0x8] sm:$0xff] %v432_v44  ;;  %1270 = vmatmul.mubr.f32.vlgmr.msra.gmra.mrb[2].mxu0 %v432_v44 }
 0x1f4   : > { %1545 = vmatpush3.bf16.msra.mxu0 %v1759_v5  ;;  %1339 = vmatprep.mubr.msk.f32.mxu0 %vm1691_vm0, %v1692_v7 }
 0x1f5   : > { %1546 = vmatprep.subr.bf16.mxu0 %v1690_v4 }
 0x1f8   : > { %1548 = vmatpush3.bf16.msra.mxu0 %v1770_v8 }
 0x1f9   : > { %1549 = vmatprep.subr.bf16.mxu0 %v1690_v4 }
 0x1fc   : > { %1551 = vmatpush3.bf16.msra.mxu0 %v1782_v11 }
 0x1fd   : > { %1552 = vmatprep.subr.bf16.mxu0 %v1690_v4 }
 0x200   : > { %1554 = vmatpush3.bf16.msra.mxu0 %v1794_v14 }
 0x201   : > { %1555 = vmatprep.subr.bf16.mxu0 %v1690_v4 }
 0x204   : > { %1557 = vmatpush3.bf16.msra.mxu0 %v1806_v17 }
 0x205   : > { %1558 = vmatprep.subr.bf16.mxu0 %v1690_v4 }
 0x208   : > { %1560 = vmatpush3.bf16.msra.mxu0 %v1818_v20 }
 0x209   : > { %1561 = vmatprep.subr.bf16.mxu0 %v1690_v4 }
 0x20c   : > { %1563 = vmatpush3.bf16.msra.mxu0 %v1830_v23 }
 0x20d   : > { %1564 = vmatprep.subr.bf16.mxu0 %v1690_v4 }
 0x210   : > { %1566 = vmatpush3.bf16.msra.mxu0 %v1842_v26 }
 0x211   : > { %1591 = vmatprep.subr.bf16.mxu0 %v1690_v4 }
 0x2c6   : > { %v503_v46 = vpop.f32.mrb[2].mxu0 }
 0x2c7   : > { %v507_v47 = vadd.f32 %v1017_v45, %v503_v46  ;;  %v1271_v48 = vpop.f32.mrb[3].mxu0 }
 0x2c9   : > { %v508_v49 = vmax.f32 %v507_v47, 0.0 }
 0x2cb   : > { %v509_v50 = vsub.f32 %v508_v49, %v432_v44 }
 0x2cd   : > { %v510_v51 = vmul.f32 %v1873_v33, %v509_v50 }
 0x2cf   : > { %v511_v52 = vadd.f32 %v510_v51, %v432_v44 }
 0x2d1   : > { %1018 = vst [vmem:[%s1744_s26 + $0x10] sm:$0xff] %v511_v52  ;;  %1305 = vmatmul.mubr.f32.vlgmr.msra.gmra.mrb[2].mxu1 %v511_v52 }
 0x2d2   : > { %1569 = vmatpush3.bf16.msra.mxu1 %v1759_v5  ;;  %1374 = vmatprep.mubr.msk.f32.mxu1 %vm1691_vm0, %v1692_v7 }
 0x2d3   : > { %1570 = vmatprep.subr.bf16.mxu1 %v1690_v4 }
 0x2d6   : > { %1572 = vmatpush3.bf16.msra.mxu1 %v1770_v8 }
 0x2d7   : > { %1573 = vmatprep.subr.bf16.mxu1 %v1690_v4 }
 0x2da   : > { %1575 = vmatpush3.bf16.msra.mxu1 %v1782_v11 }
 0x2db   : > { %1576 = vmatprep.subr.bf16.mxu1 %v1690_v4 }
 0x2de   : > { %1578 = vmatpush3.bf16.msra.mxu1 %v1794_v14 }
 0x2df   : > { %1579 = vmatprep.subr.bf16.mxu1 %v1690_v4 }
 0x2e2   : > { %1581 = vmatpush3.bf16.msra.mxu1 %v1806_v17 }
 0x2e3   : > { %1582 = vmatprep.subr.bf16.mxu1 %v1690_v4 }
 0x2e6   : > { %1584 = vmatpush3.bf16.msra.mxu1 %v1818_v20 }
 0x2e7   : > { %1585 = vmatprep.subr.bf16.mxu1 %v1690_v4 }
 0x2ea   : > { %1587 = vmatpush3.bf16.msra.mxu1 %v1830_v23 }
 0x2eb   : > { %1588 = vmatprep.subr.bf16.mxu1 %v1690_v4 }
 0x2ee   : > { %1590 = vmatpush3.bf16.msra.mxu1 %v1842_v26 }
 0x2ef   : > { %1615 = vmatprep.subr.bf16.mxu1 %v1690_v4 }
 0x3a4   : > { %v582_v54 = vpop.f32.mrb[2].mxu1 }
 0x3a5   : > { %v586_v55 = vadd.f32 %v1019_v53, %v582_v54  ;;  %v1306_v56 = vpop.f32.mrb[3].mxu1 }
 0x3a7   : > { %v587_v57 = vmax.f32 %v586_v55, 0.0 }
 0x3a9   : > { %v588_v58 = vsub.f32 %v587_v57, %v511_v52 }
 0x3ab   : > { %v589_v59 = vmul.f32 %v1873_v33, %v588_v58 }
 0x3ad   : > { %v590_v60 = vadd.f32 %v589_v59, %v511_v52 }
 0x3af   : > { %1020 = vst [vmem:[%s1744_s26 + $0x18] sm:$0xff] %v590_v60  ;;  %1340 = vmatmul.mubr.f32.vlgmr.msra.gmra.mrb[4].mxu0 %v590_v60 }
 0x3b0   : > { %1593 = vmatpush3.bf16.msra.mxu0 %v1759_v5  ;;  %1409 = vmatprep.mubr.msk.f32.mxu0 %vm1691_vm0, %v1692_v7 }
 0x3b1   : > { %1594 = vmatprep.subr.bf16.mxu0 %v1690_v4 }
 0x3b4   : > { %1596 = vmatpush3.bf16.msra.mxu0 %v1770_v8 }
 0x3b5   : > { %1597 = vmatprep.subr.bf16.mxu0 %v1690_v4 }
 0x3b8   : > { %1599 = vmatpush3.bf16.msra.mxu0 %v1782_v11 }
 0x3b9   : > { %1600 = vmatprep.subr.bf16.mxu0 %v1690_v4 }
 0x3bc   : > { %1602 = vmatpush3.bf16.msra.mxu0 %v1794_v14 }
 0x3bd   : > { %1603 = vmatprep.subr.bf16.mxu0 %v1690_v4 }
 0x3c0   : > { %1605 = vmatpush3.bf16.msra.mxu0 %v1806_v17 }
 0x3c1   : > { %1606 = vmatprep.subr.bf16.mxu0 %v1690_v4 }
 0x3c4   : > { %1608 = vmatpush3.bf16.msra.mxu0 %v1818_v20 }
 0x3c5   : > { %1609 = vmatprep.subr.bf16.mxu0 %v1690_v4 }
 0x3c8   : > { %1611 = vmatpush3.bf16.msra.mxu0 %v1830_v23 }
 0x3c9   : > { %1612 = vmatprep.subr.bf16.mxu0 %v1690_v4 }
 0x3cc   : > { %1614 = vmatpush3.bf16.msra.mxu0 %v1842_v26 }
 0x482   : > { %v661_v62 = vpop.f32.mrb[4].mxu0 }
 0x483   : > { %v665_v63 = vadd.f32 %v1021_v61, %v661_v62  ;;  %v1341_v0 = vpop.f32.mrb[5].mxu0 }
 0x485   : > { %v666_v1 = vmax.f32 %v665_v63, 0.0 }
 0x487   : > { %v667_v2 = vsub.f32 %v666_v1, %v590_v60 }
 0x489   : > { %v668_v3 = vmul.f32 %v1873_v33, %v667_v2 }
 0x48b   : > { %v669_v6 = vadd.f32 %v668_v3, %v590_v60 }
 0x48d   : > { %1022 = vst [vmem:[%s1744_s26 + $0x20] sm:$0xff] %v669_v6  ;;  %1375 = vmatmul.mubr.f32.vlgmr.msra.gmra.mrb[4].mxu1 %v669_v6 }
 0x48e   : > { %1617 = vmatpush3.bf16.msra.mxu1 %v1759_v5  ;;  %1444 = vmatprep.mubr.msk.f32.mxu1 %vm1691_vm0, %v1692_v7  ;;  %v1023_v5 = vld [vmem:[%s1739_s23 + $0x28] sm:$0xff] }
 0x48f   : > { %1618 = vmatprep.subr.bf16.mxu1 %v1690_v4 }
 0x492   : > { %1620 = vmatpush3.bf16.msra.mxu1 %v1770_v8 }
 0x493   : > { %1621 = vmatprep.subr.bf16.mxu1 %v1690_v4 }
 0x496   : > { %1623 = vmatpush3.bf16.msra.mxu1 %v1782_v11 }
 0x497   : > { %1624 = vmatprep.subr.bf16.mxu1 %v1690_v4 }
 0x49a   : > { %1626 = vmatpush3.bf16.msra.mxu1 %v1794_v14  ;;  %v1025_v14 = vld [vmem:[%s1739_s23 + $0x30] sm:$0xff] }
 0x49b   : > { %1627 = vmatprep.subr.bf16.mxu1 %v1690_v4 }
 0x49e   : > { %1629 = vmatpush3.bf16.msra.mxu1 %v1806_v17 }
 0x49f   : > { %1630 = vmatprep.subr.bf16.mxu1 %v1690_v4 }
 0x4a2   : > { %1632 = vmatpush3.bf16.msra.mxu1 %v1818_v20 }
 0x4a3   : > { %1633 = vmatprep.subr.bf16.mxu1 %v1690_v4 }
 0x4a6   : > { %1635 = vmatpush3.bf16.msra.mxu1 %v1830_v23 }
 0x4a7   : > { %1636 = vmatprep.subr.bf16.mxu1 %v1690_v4 }
 0x4aa   : > { %1638 = vmatpush3.bf16.msra.mxu1 %v1842_v26 }
 0x560   : > { %v740_v7 = vpop.f32.mrb[4].mxu1 }
 0x561   : > { %v744_v8 = vadd.f32 %v1023_v5, %v740_v7  ;;  %v1376_v9 = vpop.f32.mrb[5].mxu1 }
 0x563   : > { %v745_v10 = vmax.f32 %v744_v8, 0.0 }
 0x565   : > { %v746_v11 = vsub.f32 %v745_v10, %v669_v6 }
 0x567   : > { %v747_v12 = vmul.f32 %v1873_v33, %v746_v11 }
 0x569   : > { %v748_v13 = vadd.f32 %v747_v12, %v669_v6 }
 0x56b   : > { %1024 = vst [vmem:[%s1744_s26 + $0x28] sm:$0xff] %v748_v13  ;;  %1410 = vmatmul.mubr.f32.vlgmr.msra.gmra.mrb[6].mxu0 %v748_v13 }
 0x63e   : > { %v819_v15 = vpop.f32.mrb[6].mxu0 }
 0x63f   : > { %v823_v16 = vadd.f32 %v1025_v14, %v819_v15  ;;  %v1411_v4 = vpop.f32.mrb[7].mxu0 }
 0x641   : > { %v824_v17 = vmax.f32 %v823_v16, 0.0 }
 0x643   : > { %v825_v18 = vsub.f32 %v824_v17, %v748_v13 }
 0x645   : > { %v826_v19 = vmul.f32 %v1873_v33, %v825_v18 }
 0x647   : > { %v827_v20 = vadd.f32 %v826_v19, %v748_v13 }
 0x649   : > { %1026 = vst [vmem:[%s1744_s26 + $0x30] sm:$0xff] %v827_v20  ;;  %1445 = vmatmul.mubr.f32.vlgmr.msra.gmra.mrb[6].mxu1 %v827_v20 }
 0x71c   : > { %v898_v22 = vpop.f32.mrb[6].mxu1 }
 0x71d   : > { %v902_v23 = vadd.f32 %v1027_v21, %v898_v22  ;;  %v1446_v24 = vpop.f32.mrb[7].mxu1 }
 0x71f   : > { %v903_v25 = vmax.f32 %v902_v23, 0.0 }
 0x721   : > { %v904_v26 = vsub.f32 %v903_v25, %v827_v20 }
 0x723   : > { %v905_v27 = vmul.f32 %v1873_v33, %v904_v26 }
 0x725   : > { %v906_v28 = vadd.f32 %v905_v27, %v827_v20 }
 0x727   : > { %1028 = vst [vmem:[%s1744_s26 + $0x38] sm:$0xff] %v906_v28  ;;  %909 = vst [vmem:[#allocation2] sm:$0xff] %v906_v28 }
 0x728 PF: > { %s14_s17 = sadd.s32 1, %s1688_s17   ;;  %s2000_s15 = smov %s1684_s16 }
 0x729   : > { %p11_p6 = scmp.ge.s32.totalorder %s14_s17, 4   ;;  %s2001_s16 = smov %s2003_s18 }
 0x72b   :  { %13 = sbr.rel (!%p11_p6) target bundleno = 2 (0x2), region = 87 }

</bundles_post_ra>
